<compile_context>
chip_gen: v6e
topology: v6e:2x2x1
jax: 0.10.0
libtpu: 0.0.40
codegen_flags: <defaults>
</compile_context>

<pallas_src>
import functools

import jax
import jax.numpy as jnp
from jax import lax
from jax.experimental import pallas as pl
from jax.experimental.pallas import tpu as pltpu

BN_EPS = 1e-5


def _dense_block_kernel(x_ref, vt_ref, params_ref, bits_ref, o_ref, acc_ref, *,
                        dropout_ratio, apply_relu, use_batchnorm, training):
    k = pl.program_id(1)

    @pl.when(k == 0)
    def _init():
        acc_ref[...] = jnp.zeros_like(acc_ref)

    # Partial matmul over the In axis: bf16 x bf16 -> f32 accumulation on the MXU.
    acc_ref[...] += jnp.dot(x_ref[...], vt_ref[...],
                            preferred_element_type=jnp.float32)

    @pl.when(k == pl.num_programs(1) - 1)
    def _epilogue():
        scale = params_ref[0:1, :]     # weight-norm scale g/||v||, (1, tn)
        bias = params_ref[1:2, :]      # linear bias
        gamma = params_ref[2:3, :]     # BN weight
        beta = params_ref[3:4, :]      # BN bias

        # weight_norm applied post-matmul:  x @ (s*v).T == (x @ v.T) * s
        y = acc_ref[...] * scale + bias

        if apply_relu:
            y = jnp.maximum(y, 0.0)

        if use_batchnorm:
            # Training-mode BN: per-feature batch stats, biased variance, one pass.
            m = jnp.mean(y, axis=0, keepdims=True)
            m2 = jnp.mean(y * y, axis=0, keepdims=True)
            var = jnp.maximum(m2 - m * m, 0.0)
            y = (y - m) * lax.rsqrt(var + BN_EPS)
            y = y * gamma + beta

        if training and dropout_ratio > 0.0:
            # Inverted dropout via integer threshold on raw uint32 bits.
            # TODO(synk): RNG stream cannot bit-match torch's dropout mask.
            threshold = jnp.uint32(int(dropout_ratio * (1 << 32)))
            keep = bits_ref[...] >= threshold
            y = jnp.where(keep, y * (1.0 / (1.0 - dropout_ratio)), 0.0)

        o_ref[...] = y.astype(o_ref.dtype)


def _pick_tile(dim, pref):
    # Full dim if small or not evenly tileable, otherwise a hardware-friendly tile.
    if dim <= pref or dim % pref != 0:
        return dim
    return pref


def dense_block(x, v, g, b, gamma, beta, dropout_key, *, dropout_ratio=0.25,
                apply_relu=True, use_batchnorm=True, training=True,
                tn=256, tk=512):
    """x: (B, In) f32; v: (Out, In); g: (Out,1)|(Out,); b/gamma/beta: (Out,)-like."""
    B, In = x.shape
    Out = v.shape[0]

    # ---- wrapper-side prep (XLA), keeps the kernel lean ----
    v32 = v.astype(jnp.float32)
    inv_norm = lax.rsqrt(jnp.sum(v32 * v32, axis=1))                  # (Out,)
    scale = g.reshape(-1).astype(jnp.float32) * inv_norm              # g / ||v||
    params = jnp.stack(
        [scale,
         b.reshape(-1).astype(jnp.float32),
         gamma.reshape(-1).astype(jnp.float32),
         beta.reshape(-1).astype(jnp.float32)], axis=0)               # (4, Out)

    x_bf = x.astype(jnp.bfloat16)                                     # (B, In)
    vt_bf = v32.T.astype(jnp.bfloat16)                                # (In, Out)
    bits = jax.random.bits(dropout_key, (B, Out), dtype=jnp.uint32)   # dropout bits

    tn = _pick_tile(Out, tn)
    tk = _pick_tile(In, tk)
    grid = (Out // tn, In // tk)

    kernel = functools.partial(_dense_block_kernel,
                               dropout_ratio=float(dropout_ratio),
                               apply_relu=bool(apply_relu),
                               use_batchnorm=bool(use_batchnorm),
                               training=bool(training))

    return pl.pallas_call(
        kernel,
        out_shape=jax.ShapeDtypeStruct((B, Out), jnp.float32),
        grid_spec=pltpu.PrefetchScalarGridSpec(
            num_scalar_prefetch=0,
            grid=grid,
            in_specs=[
                pl.BlockSpec((B, tk), lambda i, k: (0, k)),    # x   (bf16)
                pl.BlockSpec((tk, tn), lambda i, k: (k, i)),   # v.T (bf16)
                pl.BlockSpec((4, tn), lambda i, k: (0, i)),    # packed scale/b/gamma/beta
                pl.BlockSpec((B, tn), lambda i, k: (0, i)),    # dropout bits (uint32)
            ],
            out_specs=pl.BlockSpec((B, tn), lambda i, k: (0, i)),
            scratch_shapes=[pltpu.VMEM((B, tn), jnp.float32)],
        ),
        compiler_params=pltpu.CompilerParams(
            dimension_semantics=("parallel", "arbitrary")),
    )(x_bf, vt_bf, params, bits)


if __name__ == "__main__":
    # Small shapes implied by the module: a dense layer on (batch, features).
    B, IN, OUT = 8, 32, 64
    DROPOUT = 0.25

    key = jax.random.PRNGKey(0)
    kv, kb, kx, kd = jax.random.split(key, 4)

    # Deterministic parameter init matching nn.Linear(IN, OUT) + weight_norm
    # (torch init: g = ||v||_row) + BatchNorm1d(OUT).
    bound = 1.0 / (IN ** 0.5)
    v = jax.random.uniform(kv, (OUT, IN), jnp.float32, -bound, bound)
    g = jnp.linalg.norm(v, axis=1, keepdims=True)                     # (OUT, 1)
    b = jax.random.uniform(kb, (OUT,), jnp.float32, -bound, bound)
    gamma = jnp.ones((OUT,), jnp.float32)
    beta = jnp.zeros((OUT,), jnp.float32)

    x = jax.random.normal(kx, (B, IN), jnp.float32)

    out = dense_block(x, v, g, b, gamma, beta, kd,
                      dropout_ratio=DROPOUT, apply_relu=True,
                      use_batchnorm=True, training=True)
    jax.block_until_ready(out)
    assert out.shape == (B, OUT) and out.dtype == jnp.float32
    assert bool(jnp.all(jnp.isfinite(out)))
    print("KERNEL_OK")
</pallas_src>

<mosaic_0001>
module attributes {stable_mosaic.version = 11 : i64} {
  func.func @_dense_block_kernel(%arg0: i32, %arg1: i32, %arg2: memref<8x32xbf16, #tpu.memory_space<vmem>>, %arg3: memref<32x64xbf16, #tpu.memory_space<vmem>>, %arg4: memref<4x64xf32, #tpu.memory_space<vmem>>, %arg5: memref<8x64xi32, #tpu.memory_space<vmem>>, %arg6: memref<8x64xf32, #tpu.memory_space<vmem>>, %arg7: memref<8x64xf32, #tpu.memory_space<vmem>>) attributes {dimension_semantics = [#tpu.dimension_semantics<parallel>, #tpu.dimension_semantics<arbitrary>], iteration_bounds = array<i64: 1, 1>, scalar_prefetch = 0 : i64, scratch_operands = 1 : i64, tpu.core_type = #tpu.core_type<tc>, window_params = [{transform_indices = @transform_0, window_bounds = array<i64: 8, 32>}, {transform_indices = @transform_1, window_bounds = array<i64: 32, 64>}, {transform_indices = @transform_2, window_bounds = array<i64: 4, 64>}, {transform_indices = @transform_3, window_bounds = array<i64: 8, 64>}, {transform_indices = @transform_4, window_bounds = array<i64: 8, 64>}]} {
    %c0_i32 = arith.constant 0 : i32
    %0 = arith.cmpi eq, %arg1, %c0_i32 : i32
    %1 = arith.extui %0 : i1 to i32
    %c0_i32_0 = arith.constant 0 : i32
    %2 = arith.cmpi ne, %1, %c0_i32_0 : i32
    scf.if %2 {
      %cst_10 = arith.constant 0.000000e+00 : f32
      %12 = vector.broadcast %cst_10 : f32 to vector<8x64xf32>
      %c0_11 = arith.constant 0 : index
      %c0_12 = arith.constant 0 : index
      %13 = vector.load %arg7[%c0_11, %c0_12] : memref<8x64xf32, #tpu.memory_space<vmem>>, vector<8x64xf32>
      tpu.vector_store %arg7[%c0_11, %c0_12], %12 {strides = array<i32>} : memref<8x64xf32, #tpu.memory_space<vmem>>, vector<8x64xf32>,
    } else {
    }
    %c0 = arith.constant 0 : index
    %c0_1 = arith.constant 0 : index
    %3 = vector.load %arg7[%c0, %c0_1] : memref<8x64xf32, #tpu.memory_space<vmem>>, vector<8x64xf32>
    %c0_2 = arith.constant 0 : index
    %c0_3 = arith.constant 0 : index
    %4 = vector.load %arg2[%c0_2, %c0_3] : memref<8x32xbf16, #tpu.memory_space<vmem>>, vector<8x32xbf16>
    %c0_4 = arith.constant 0 : index
    %c0_5 = arith.constant 0 : index
    %5 = vector.load %arg3[%c0_4, %c0_5] : memref<32x64xbf16, #tpu.memory_space<vmem>>, vector<32x64xbf16>
    %cst = arith.constant dense<0.000000e+00> : vector<8x64xf32>
    %6 = tpu.matmul %4, %5, %cst {dimension_numbers = #tpu.dot_dimension_numbers<[1], [0], [0], [1], [0, 0, 1, 1], [], []>} : vector<8x32xbf16>, vector<32x64xbf16>, vector<8x64xf32> -> vector<8x64xf32>
    %7 = arith.addf %3, %6 : vector<8x64xf32>
    %c0_6 = arith.constant 0 : index
    %c0_7 = arith.constant 0 : index
    %8 = vector.load %arg7[%c0_6, %c0_7] : memref<8x64xf32, #tpu.memory_space<vmem>>, vector<8x64xf32>
    tpu.vector_store %arg7[%c0_6, %c0_7], %7 {strides = array<i32>} : memref<8x64xf32, #tpu.memory_space<vmem>>, vector<8x64xf32>,
    %c0_i32_8 = arith.constant 0 : i32
    %9 = arith.cmpi eq, %arg1, %c0_i32_8 : i32
    %10 = arith.extui %9 : i1 to i32
    %c0_i32_9 = arith.constant 0 : i32
    %11 = arith.cmpi ne, %10, %c0_i32_9 : i32
    scf.if %11 {
      %c0_10 = arith.constant 0 : index
      %c0_11 = arith.constant 0 : index
      %12 = vector.load %arg4[%c0_10, %c0_11] : memref<4x64xf32, #tpu.memory_space<vmem>>, vector<1x64xf32>
      %c1 = arith.constant 1 : index
      %c0_12 = arith.constant 0 : index
      %13 = vector.load %arg4[%c1, %c0_12] : memref<4x64xf32, #tpu.memory_space<vmem>>, vector<1x64xf32>
      %c2 = arith.constant 2 : index
      %c0_13 = arith.constant 0 : index
      %14 = vector.load %arg4[%c2, %c0_13] : memref<4x64xf32, #tpu.memory_space<vmem>>, vector<1x64xf32>
      %c3 = arith.constant 3 : index
      %c0_14 = arith.constant 0 : index
      %15 = vector.load %arg4[%c3, %c0_14] : memref<4x64xf32, #tpu.memory_space<vmem>>, vector<1x64xf32>
      %c0_15 = arith.constant 0 : index
      %c0_16 = arith.constant 0 : index
      %16 = vector.load %arg7[%c0_15, %c0_16] : memref<8x64xf32, #tpu.memory_space<vmem>>, vector<8x64xf32>
      %17 = vector.broadcast %12 : vector<1x64xf32> to vector<8x64xf32>
      %18 = arith.mulf %16, %17 : vector<8x64xf32>
      %19 = vector.broadcast %13 : vector<1x64xf32> to vector<8x64xf32>
      %20 = arith.addf %18, %19 : vector<8x64xf32>
      %cst_17 = arith.constant 0.000000e+00 : f32
      %21 = vector.broadcast %cst_17 : f32 to vector<8x64xf32>
      %22 = arith.maximumf %20, %21 : vector<8x64xf32>
      %cst_18 = arith.constant dense<0.000000e+00> : vector<64xf32>
      %23 = vector.multi_reduction <add>, %22, %cst_18 [0] : vector<8x64xf32> to vector<64xf32>
      %24 = vector.shape_cast %23 : vector<64xf32> to vector<1x64xf32>
      %cst_19 = arith.constant 8.000000e+00 : f32
      %25 = vector.broadcast %cst_19 : f32 to vector<1x64xf32>
      %26 = arith.divf %24, %25 : vector<1x64xf32>
      %27 = arith.mulf %22, %22 : vector<8x64xf32>
      %cst_20 = arith.constant dense<0.000000e+00> : vector<64xf32>
      %28 = vector.multi_reduction <add>, %27, %cst_20 [0] : vector<8x64xf32> to vector<64xf32>
      %29 = vector.shape_cast %28 : vector<64xf32> to vector<1x64xf32>
      %cst_21 = arith.constant 8.000000e+00 : f32
      %30 = vector.broadcast %cst_21 : f32 to vector<1x64xf32>
      %31 = arith.divf %29, %30 : vector<1x64xf32>
      %32 = arith.mulf %26, %26 : vector<1x64xf32>
      %33 = arith.subf %31, %32 : vector<1x64xf32>
      %cst_22 = arith.constant 0.000000e+00 : f32
      %34 = vector.broadcast %cst_22 : f32 to vector<1x64xf32>
      %35 = arith.maximumf %33, %34 : vector<1x64xf32>
      %36 = vector.broadcast %26 : vector<1x64xf32> to vector<8x64xf32>
      %37 = arith.subf %22, %36 : vector<8x64xf32>
      %cst_23 = arith.constant 9.99999974E-6 : f32
      %38 = vector.broadcast %cst_23 : f32 to vector<1x64xf32>
      %39 = arith.addf %35, %38 : vector<1x64xf32>
      %40 = math.rsqrt %39 : vector<1x64xf32>
      %41 = vector.broadcast %40 : vector<1x64xf32> to vector<8x64xf32>
      %42 = arith.mulf %37, %41 : vector<8x64xf32>
      %43 = vector.broadcast %14 : vector<1x64xf32> to vector<8x64xf32>
      %44 = arith.mulf %42, %43 : vector<8x64xf32>
      %45 = vector.broadcast %15 : vector<1x64xf32> to vector<8x64xf32>
      %46 = arith.addf %44, %45 : vector<8x64xf32>
      %c0_24 = arith.constant 0 : index
      %c0_25 = arith.constant 0 : index
      %47 = vector.load %arg5[%c0_24, %c0_25] : memref<8x64xi32, #tpu.memory_space<vmem>>, vector<8x64xi32>
      %c1073741824_i32 = arith.constant 1073741824 : i32
      %48 = vector.broadcast %c1073741824_i32 : i32 to vector<8x64xi32>
      %49 = arith.cmpi uge, %47, %48 : vector<8x64xi32>
      %cst_26 = arith.constant 1.33333337 : f32
      %50 = vector.broadcast %cst_26 : f32 to vector<8x64xf32>
      %51 = arith.mulf %46, %50 : vector<8x64xf32>
      %cst_27 = arith.constant 0.000000e+00 : f32
      %52 = vector.broadcast %cst_27 : f32 to vector<8x64xf32>
      %53 = arith.select %49, %51, %52 : vector<8x64xi1>, vector<8x64xf32>
      %c0_28 = arith.constant 0 : index
      %c0_29 = arith.constant 0 : index
      %54 = vector.load %arg6[%c0_28, %c0_29] : memref<8x64xf32, #tpu.memory_space<vmem>>, vector<8x64xf32>
      tpu.vector_store %arg6[%c0_28, %c0_29], %53 {strides = array<i32>} : memref<8x64xf32, #tpu.memory_space<vmem>>, vector<8x64xf32>,
    } else {
    }
    return
  }
  func.func @transform_0(%arg0: i32, %arg1: i32) -> (i32, i32) {
    %c0_i32 = arith.constant 0 : i32
    %c0_i32_0 = arith.constant 0 : i32
    return %c0_i32, %arg1 : i32, i32
  }
  func.func @transform_1(%arg0: i32, %arg1: i32) -> (i32, i32) {
    %c0_i32 = arith.constant 0 : i32
    return %arg1, %arg0 : i32, i32
  }
  func.func @transform_2(%arg0: i32, %arg1: i32) -> (i32, i32) {
    %c0_i32 = arith.constant 0 : i32
    %c0_i32_0 = arith.constant 0 : i32
    return %c0_i32, %arg0 : i32, i32
  }
  func.func @transform_3(%arg0: i32, %arg1: i32) -> (i32, i32) {
    %c0_i32 = arith.constant 0 : i32
    %c0_i32_0 = arith.constant 0 : i32
    return %c0_i32, %arg0 : i32, i32
  }
  func.func @transform_4(%arg0: i32, %arg1: i32) -> (i32, i32) {
    %c0_i32 = arith.constant 0 : i32
    %c0_i32_0 = arith.constant 0 : i32
    return %c0_i32, %arg0 : i32, i32
  }
}

</mosaic_0001>

<bundles_post_ra>
// kernel: tpu_custom_call.1
= control target key start
LH: loop header
LB: loop body
LE: loop exit
PB: predicated region body
PF: predicated region fallthrough
CT: control target
= control target key end

     0   :  { %9 = vsyncpa [#allocation4], 0  ;;  %s408_s0 = inlined_call_operand.hbm [shape: bf16[8,32], index: 0, kind: input, shape index: {}]   ;;  %s409_s1 = inlined_call_operand.hbm [shape: bf16[32,64], index: 1, kind: input, shape index: {}]   ;;  %s410_s2 = inlined_call_operand.hbm [shape: f32[4,64], index: 2, kind: input, shape index: {}]   ;;  %s411_s3 = inlined_call_operand.hbm [shape: u32[8,64], index: 3, kind: input, shape index: {}]   ;;  %s412_s4 = inlined_call_operand.hbm [shape: f32[8,64], index: 4, kind: output, shape index: {}]  }
   0x1   :  { %10 = vsyncpa [#allocation7], 0 }
   0x2   :  { %11 = vsyncpa [#allocation10], 0 }
   0x3   :  { %12 = vsyncpa [#allocation5], 0  ;;  %s354_s15 = smov [#allocation6]  }
   0x4   :  { %s28_s16 = sshll.u32 %s354_s15, 4  ;;  %s29_s16 = int_to_ptr.vmem [resolvable:$true] %s28_s16 }
   0x5   :  { %s254_s17 = scalar_lea.vmem %s29_s16, 256  ;;  %p259_p1 = scmp.lt.s32.totalorder %s29_s16, %s29_s16 }
   0x6   :  { %p255_p0 = scmp.ne.s32.totalorder %s29_s16, %s254_s17  ;;  %p260_p2 = scmp.lt.s32.totalorder %s254_s17, %s254_s17 }
   0x8   :  { %p261_p3 = por %p260_p2, %p259_p1 }
   0xa   :  { %p262_p4 = pnand %p261_p3, %p255_p0 }
   0xc   :  { %265 = shalt.err (!%p262_p4)
}
   0xd   :  { %s355_s18 = smov 64   ;;  %s356_s19 = smov 4  }
   0xe   :  { %34 = dma.hbm_to_vmem [thread:$0]  %s409_s1, 256, %s29_s16, [#allocation7], %s355_s18, %s355_s18, %s356_s19  }
   0xf   :  { %s357_s22 = smov [#allocation3]   ;;  %s358_s24 = smov [#allocation8]  }
  0x10   :  { %s19_s23 = sshll.u32 %s357_s22, 4  ;;  %s41_s25 = sshll.u32 %s358_s24, 4  ;;  %s20_s23 = int_to_ptr.vmem [resolvable:$true] %s19_s23  ;;  %s42_s25 = int_to_ptr.vmem [resolvable:$true] %s41_s25 }
  0x11   :  { %s274_s26 = scalar_lea.vmem %s20_s23, 64  ;;  %p279_p6 = scmp.lt.s32.totalorder %s20_s23, %s20_s23 }
  0x12   :  { %p275_p5 = scmp.ne.s32.totalorder %s20_s23, %s274_s26  ;;  %p280_p7 = scmp.lt.s32.totalorder %s274_s26, %s274_s26 }
  0x14   :  { %p281_p8 = por %p280_p7, %p279_p6 }
  0x16   :  { %p282_p9 = pnand %p281_p8, %p275_p5 }
  0x18   :  { %285 = shalt.err (!%p282_p9)
}
  0x19   :  { %22 = dma.hbm_to_vmem [thread:$0]  %s408_s0, 64, %s20_s23, [#allocation4]  }
  0x1a   :  { %s294_s29 = scalar_lea.vmem %s42_s25, 64  ;;  %p299_p11 = scmp.lt.s32.totalorder %s42_s25, %s42_s25 }
  0x1b   :  { %p295_p10 = scmp.ne.s32.totalorder %s42_s25, %s294_s29  ;;  %p300_p12 = scmp.lt.s32.totalorder %s294_s29, %s294_s29 }
  0x1d   :  { %p301_p13 = por %p300_p12, %p299_p11 }
  0x1f   :  { %p302_p0 = pnand %p301_p13, %p295_p10 }
  0x21   :  { %305 = shalt.err (!%p302_p0)
}
  0x22   :  { %44 = dma.hbm_to_vmem [thread:$0]  %s410_s2, 64, %s42_s25, [#allocation7]  }
  0x23   :  { %s359_s5 = smov [#allocation9]  }
  0x24   :  { %s51_s6 = sshll.u32 %s359_s5, 4  ;;  %s52_s6 = int_to_ptr.vmem [resolvable:$true] %s51_s6 }
  0x25   :  { %s314_s7 = scalar_lea.vmem %s52_s6, 128  ;;  %p319_p2 = scmp.lt.s32.totalorder %s52_s6, %s52_s6 }
  0x26   :  { %p315_p1 = scmp.ne.s32.totalorder %s52_s6, %s314_s7  ;;  %p320_p3 = scmp.lt.s32.totalorder %s314_s7, %s314_s7 }
  0x28   :  { %p321_p4 = por %p320_p3, %p319_p2 }
  0x2a   :  { %p322_p5 = pnand %p321_p4, %p315_p1 }
  0x2c   :  { %325 = shalt.err (!%p322_p5)
}
  0x2d   :  { %54 = dma.hbm_to_vmem [thread:$0]  %s411_s3, 128, %s52_s6, [#allocation10]  }
  0x2e   :  { %346 = dma.done.wait [#allocation4], 64  }
  0x2f   :  { %347 = vsyncadd [#allocation4], 4294967232 }
  0x30   :  { %348 = dma.done.wait [#allocation7], 320  }
  0x31   :  { %349 = vsyncadd [#allocation7], 4294966976 }
  0x32   :  { %350 = dma.done.wait [#allocation10], 128  }
  0x33   :  { %351 = vsyncadd [#allocation10], 4294967168  ;;  %vm72_vm0 = vcmask 523264   ;;  %v360_v0 = vmov 0.0   ;;  %vm361_vm1 = vmmov 0   ;;  %v242_v1 = vld [vmem:[#allocation6 + $0x8] sm:$0xff]  }
  0x34   :  { %73 = vst.msk [vmem:[#allocation2] sm:$0xff] %vm72_vm0, %v360_v0  ;;  %225 = vmatprep.subr.bf16.mxu0 %v360_v0  ;;  %229 = vmatprep.mubr.msk.bf16.mxu0 %vm361_vm1, %v360_v0  ;;  %v243_v2 = vld [vmem:[#allocation6] sm:$0xff]   ;;  %v75_v3 = vld [vmem:[#allocation3] sm:$0xf]  ;;  %vm92_vm2 = vcmask 261120   ;;  %v193_v43 = vld [vmem:[#allocation9] sm:$0xff] }
  0x35   :  { %226 = vmatpush3.bf16.msra.mxu0 %v242_v1  ;;  %v218_v10 = vld [vmem:[#allocation8] ss:$0 sm:$0xff]  ;;  %v219_v11 = vld [vmem:[#allocation8 + $0x1] ss:$0 sm:$0xff]  ;;  %v220_v39 = vld [vmem:[#allocation8 + $0x2] ss:$0 sm:$0xff] }
  0x36   :  { %227 = vmatprep.subr.bf16.mxu0 %v360_v0  ;;  %v221_v41 = vld [vmem:[#allocation8 + $0x3] ss:$0 sm:$0xff]  ;;  %s362_s2 = smov [#allocation11]   ;;  %vm194_vm3 = vcmp.ge.u32.totalorder %v193_v43, 1073741824 }
  0x37   :  { %s204_s3 = sshll.u32 %s362_s2, 4  ;;  %s205_s3 = int_to_ptr.vmem [resolvable:$true] %s204_s3 }
  0x38   :  { %s326_s9 = scalar_lea.vmem %s205_s3, 128  ;;  %p331_p7 = scmp.lt.s32.totalorder %s205_s3, %s205_s3 }
  0x39   :  { %228 = vmatpush3.bf16.msra.mxu0 %v243_v2  ;;  %p327_p6 = scmp.ne.s32.totalorder %s205_s3, %s326_s9  ;;  %p332_p8 = scmp.lt.s32.totalorder %s326_s9, %s326_s9 }
  0x3b   :  { %v74_v4 = vld [vmem:[#allocation2] sm:$0xff]  ;;  %p333_p9 = por %p332_p8, %p331_p7 }
  0x3c   :  { %230 = vmatmul.mubr.msk.bf16.vlgmr.msra.gmra.mxu0 %vm92_vm2, %v75_v3 }
  0x3d   :  { %p334_p10 = pnand %p333_p9, %p327_p6 }
  0xfc   :  { %v130_v5 = vpop.f32.mrf.mxu0 }
  0xfd   :  { %v136_v6 = vadd.f32 %v130_v5, %v74_v4 }
  0xfe   :  { %v231_v7 = vpop.f32.mrf.mxu0 }
  0xff   :  { %138 = vst.msk [vmem:[#allocation2] sm:$0xff] %vm72_vm0, %v136_v6 }
 0x100   :  { %v133_v8 = vpop.f32.mrf.mxu0 }
 0x102   :  { %v232_v9 = vpop.f32.mrf.mxu0 }
 0x106   :  { %v146_v12 = vld [vmem:[#allocation2] sm:$0xff] }
 0x107   :  { %v151_v13 = vmul.f32 %v218_v10, %v146_v12 }
 0x109   :  { %v156_v14 = vadd.f32 %v219_v11, %v151_v13 }
 0x10b   :  { %v157_v15 = vmax.f32 %v156_v14, 0.0 }
 0x10d   :  { %v158_v16 = vsel %vm72_vm0, %v157_v15, 0.0  ;;  %v167_v17 = vmul.f32 %v157_v15, %v157_v15 }
 0x10e   :  { %v159_v18 = vrot.slane %v158_v16, 4 }
 0x10f   :  { %v168_v19 = vsel %vm72_vm0, %v167_v17, 0.0 }
 0x110   :  { %v160_v20 = vadd.f32 %v159_v18, %v158_v16  ;;  %v169_v21 = vrot.slane %v168_v19, 4 }
 0x112   :  { %v161_v22 = vrot.slane %v160_v20, 2  ;;  %v170_v23 = vadd.f32 %v169_v21, %v168_v19 }
 0x114   :  { %v162_v24 = vadd.f32 %v161_v22, %v160_v20  ;;  %v171_v25 = vrot.slane %v170_v23, 2 }
 0x116   :  { %v163_v26 = vrot.slane %v162_v24, 1  ;;  %v172_v27 = vadd.f32 %v171_v25, %v170_v23 }
 0x118   :  { %v164_v28 = vadd.f32 %v163_v26, %v162_v24  ;;  %v173_v29 = vrot.slane %v172_v27, 1 }
 0x11a   :  { %v166_v30 = vmul.f32 0.125, %v164_v28  ;;  %v174_v31 = vadd.f32 %v173_v29, %v172_v27 }
 0x11c   :  { %v175_v32 = vmul.f32 0.125, %v174_v31  ;;  %v176_v33 = vmul.f32 %v166_v30, %v166_v30  ;;  %v179_v37 = vsub.f32 %v157_v15, %v166_v30 }
 0x11e   :  { %v177_v34 = vsub.f32 %v175_v32, %v176_v33 }
 0x120   :  { %v178_v35 = vmax.f32 %v177_v34, 0.0 }
 0x122   :  { %v180_v36 = vadd.f32 1e-05, %v178_v35 }
 0x124   :  { %244 = vrsqrt.f32 %v180_v36 }
 0x131   :  { %v245_v38 = vpop.eup %244 }
 0x132   :  { %v182_v40 = vmul.f32 %v245_v38, %v179_v37 }
 0x134   :  { %v187_v42 = vmul.f32 %v220_v39, %v182_v40 }
 0x136   :  { %v192_v44 = vadd.f32 %v221_v41, %v187_v42 }
 0x138   :  { %v195_v45 = vmul.f32 1.3333334, %v192_v44 }
 0x13a   :  { %v196_v46 = vsel %vm194_vm3, %v195_v45, 0.0 }
 0x13b   :  { %197 = vst.msk [vmem:[#allocation11] sm:$0xff] %vm72_vm0, %v196_v46 }
 0x13c   :  { %337 = shalt.err (!%p334_p10)
}
 0x13d   :  { %207 = dma.vmem_to_hbm [thread:$0]  %s205_s3, 128, %s412_s4, [#allocation5]  }
 0x13e   :  { %352 = dma.done.wait [#allocation5], 128  }
 0x13f   :  { %353 = vsyncadd [#allocation5], 4294967168 }
 0x140   :  { %211 = vsyncpa [#allocation4], 1 }
 0x141   :  { %212 = vsyncpa [#allocation7], 1 }
 0x142   :  { %213 = vsyncpa [#allocation10], 1 }
 0x143   :  { %214 = vsyncpa [#allocation5], 1 }

</bundles_post_ra>
